<compile_context>
chip_gen: v7x
topology: tpu7x:2x2x1
jax: 0.10.0
libtpu: 0.0.40
codegen_flags: <defaults>
</compile_context>

<pallas_src>
import functools

import jax
import jax.numpy as jnp
from jax.experimental import pallas as pl
from jax.experimental.pallas import tpu as pltpu


LANE = 128   # lane width / channel padding multiple
TM = 128     # destination-node (row) tile
TK = 128     # source-node (contraction) tile for A @ XW
TN = 128     # output-column tile of the feature-transform matmul


def round_up(x, m):
    return (x + m - 1) // m * m


# ---------------- kernel 1: batched (lane-dense) feature transform ----------
# H_cat = x_p @ W_cat, where W_cat packs [W_root | W_0 | ... | W_{R-1}] along
# the lane axis. One output tile per grid point; contraction dim kept whole
# (padded Cin is modest for RGCN layers).
def feature_transform_kernel(x_ref, w_ref, o_ref):
    o_ref[...] = jnp.dot(x_ref[...], w_ref[...],
                         preferred_element_type=jnp.float32)


def feature_transform(x_p, w_cat):
    Np, Cin_p = x_p.shape
    _, Wtot = w_cat.shape
    return pl.pallas_call(
        feature_transform_kernel,
        out_shape=jax.ShapeDtypeStruct((Np, Wtot), jnp.float32),
        grid_spec=pltpu.PrefetchScalarGridSpec(
            num_scalar_prefetch=0,
            grid=(Np // TM, Wtot // TN),
            in_specs=[
                pl.BlockSpec((TM, Cin_p), lambda i, j: (i, 0)),
                pl.BlockSpec((Cin_p, TN), lambda i, j: (0, j)),
            ],
            out_specs=pl.BlockSpec((TM, TN), lambda i, j: (i, j)),
        ),
        compiler_params=pltpu.CompilerParams(
            dimension_semantics=("parallel", "parallel")),
    )(x_p, w_cat)


# ---------------- kernel 2: relational aggregation --------------------------
# For each destination-row tile i:  o = h_root + b + sum_r sum_k A[r,i,k] @ XW[k,r]
# Output block is resident across the two reduction axes (r, k); accumulate
# directly into o_ref, apply ReLU only at the last reduction step.
def rgcn_aggregate_kernel(hroot_ref, bias_ref, a_ref, xw_ref, o_ref,
                          *, apply_relu):
    r = pl.program_id(1)
    k = pl.program_id(2)

    @pl.when((r == 0) & (k == 0))
    def _():
        o_ref[...] = hroot_ref[...] + bias_ref[...]

    o_ref[...] += jnp.dot(a_ref[...], xw_ref[...],
                          preferred_element_type=jnp.float32)

    if apply_relu:
        @pl.when((r == pl.num_programs(1) - 1) & (k == pl.num_programs(2) - 1))
        def _():
            o_ref[...] = jnp.maximum(o_ref[...], 0.0)


def rgcn_aggregate(a_bf16, xw_bf16, h_root, bias_p, *, apply_relu):
    R, Np, _ = a_bf16.shape
    Cout_p = h_root.shape[1]
    kernel = functools.partial(rgcn_aggregate_kernel, apply_relu=apply_relu)
    return pl.pallas_call(
        kernel,
        out_shape=jax.ShapeDtypeStruct((Np, Cout_p), jnp.float32),
        grid_spec=pltpu.PrefetchScalarGridSpec(
            num_scalar_prefetch=0,
            grid=(Np // TM, R, Np // TK),
            in_specs=[
                pl.BlockSpec((TM, Cout_p), lambda i, r, k: (i, 0)),    # h_root
                pl.BlockSpec((1, Cout_p), lambda i, r, k: (0, 0)),     # bias
                pl.BlockSpec((pl.Squeezed(), TM, TK),
                             lambda i, r, k: (r, i, k)),               # A[r] tile
                pl.BlockSpec((TK, Cout_p), lambda i, r, k: (k, r)),    # XW tile
            ],
            out_specs=pl.BlockSpec((TM, Cout_p), lambda i, r, k: (i, 0)),
        ),
        compiler_params=pltpu.CompilerParams(
            dimension_semantics=("parallel", "arbitrary", "arbitrary")),
    )(h_root, bias_p, a_bf16, xw_bf16)


# ------------------------------ layer wrapper --------------------------------
def rgcn_layer(a_bf16, x_p, W, W_root, bias, *, apply_relu):
    """One RGCNConv layer. x_p is (Np, Cin_p) zero-padded; returns (Np, Cout_p)."""
    R, Cin, Cout = W.shape
    Np, Cin_p = x_p.shape
    Cout_p = round_up(Cout, LANE)
    assert Cin_p == round_up(Cin, LANE)

    # Pack [W_root | W_0 | ... | W_{R-1}] into one lane-dense weight matrix.
    W_p = jnp.zeros((R, Cin_p, Cout_p), jnp.float32).at[:, :Cin, :Cout].set(W)
    Wr_p = jnp.zeros((Cin_p, Cout_p), jnp.float32).at[:Cin, :Cout].set(W_root)
    w_all = jnp.transpose(W_p, (1, 0, 2)).reshape(Cin_p, R * Cout_p)
    w_cat = jnp.concatenate([Wr_p, w_all], axis=1)          # (Cin_p, (R+1)*Cout_p)
    bias_p = jnp.zeros((1, Cout_p), jnp.float32).at[:, :Cout].set(
        jnp.asarray(bias, jnp.float32).reshape(1, Cout))

    h_cat = feature_transform(x_p, w_cat)                    # (Np, (R+1)*Cout_p) f32
    h_root = h_cat[:, :Cout_p]                               # f32 root term
    xw_all = h_cat[:, Cout_p:].astype(jnp.bfloat16)          # bf16 message stream

    return rgcn_aggregate(a_bf16, xw_all, h_root, bias_p, apply_relu=apply_relu)


# ------------------------------ JAX glue --------------------------------------
def build_relational_adjacency(edge_index, edge_type, num_nodes_padded,
                               num_relations):
    """Dense normalized adjacency A[r, dst, src] = 1/|N_r(dst)|, cast to bf16."""
    src = edge_index[0]
    dst = edge_index[1]
    A = jnp.zeros((num_relations, num_nodes_padded, num_nodes_padded),
                  jnp.float32)
    A = A.at[edge_type, dst, src].add(1.0)
    deg = A.sum(axis=2, keepdims=True)                 # in-degree per relation
    A = jnp.where(deg > 0, A / jnp.maximum(deg, 1.0), 0.0)
    return A.astype(jnp.bfloat16)


def glorot(key, shape):
    fan_in, fan_out = shape[-2], shape[-1]
    limit = jnp.sqrt(6.0 / (fan_in + fan_out))
    return jax.random.uniform(key, shape, jnp.float32, -limit, limit)


def init_rgcn_params(key, in_c, hid_c, out_c, num_rel):
    ks = jax.random.split(key, 4)
    return {
        "conv1": {
            "W": glorot(ks[0], (num_rel, in_c, hid_c)),
            "W_root": glorot(ks[1], (in_c, hid_c)),
            "b": jnp.zeros((1, hid_c), jnp.float32),
        },
        "conv2": {
            "W": glorot(ks[2], (num_rel, hid_c, out_c)),
            "W_root": glorot(ks[3], (hid_c, out_c)),
            "b": jnp.zeros((1, out_c), jnp.float32),
        },
    }


def rgcn_forward(params, x, edge_index, edge_type, num_relations):
    N, Cin = x.shape
    Np = round_up(N, max(TM, TK))
    Cin_p = round_up(Cin, LANE)
    x_p = jnp.zeros((Np, Cin_p), jnp.float32).at[:N, :Cin].set(x)

    A = build_relational_adjacency(edge_index, edge_type, Np, num_relations)

    p1, p2 = params["conv1"], params["conv2"]
    h = rgcn_layer(A, x_p, p1["W"], p1["W_root"], p1["b"], apply_relu=True)
    out_p = rgcn_layer(A, h, p2["W"], p2["W_root"], p2["b"], apply_relu=False)

    Cout = p2["W"].shape[2]
    return out_p[:N, :Cout]


# ------------------------------- main -----------------------------------------
if __name__ == "__main__":
    key = jax.random.PRNGKey(0)
    k_x, k_src, k_dst, k_et, k_p = jax.random.split(key, 5)

    num_nodes = 16
    in_channels = 8
    hidden_channels = 32
    out_channels = 8
    num_relations = 4
    num_edges = 40

    x = jax.random.normal(k_x, (num_nodes, in_channels), jnp.float32)
    src = jax.random.randint(k_src, (num_edges,), 0, num_nodes, jnp.int32)
    dst = jax.random.randint(k_dst, (num_edges,), 0, num_nodes, jnp.int32)
    edge_index = jnp.stack([src, dst], axis=0)                    # (2, E)
    edge_type = jax.random.randint(k_et, (num_edges,), 0, num_relations,
                                   jnp.int32)

    params = init_rgcn_params(k_p, in_channels, hidden_channels, out_channels,
                              num_relations)

    out = rgcn_forward(params, x, edge_index, edge_type, num_relations)
    out = jax.block_until_ready(out)
    assert out.shape == (num_nodes, out_channels)
    print("KERNEL_OK")
</pallas_src>

<mosaic_0001>
module attributes {stable_mosaic.version = 11 : i64} {
  func.func @feature_transform_kernel(%arg0: i32, %arg1: i32, %arg2: memref<128x128xf32, #tpu.memory_space<vmem>>, %arg3: memref<128x128xf32, #tpu.memory_space<vmem>>, %arg4: memref<128x128xf32, #tpu.memory_space<vmem>>) attributes {dimension_semantics = [#tpu.dimension_semantics<parallel>, #tpu.dimension_semantics<parallel>], iteration_bounds = array<i64: 1, 5>, scalar_prefetch = 0 : i64, scratch_operands = 0 : i64, tpu.core_type = #tpu.core_type<tc>, window_params = [{transform_indices = @transform_0, window_bounds = array<i64: 128, 128>}, {transform_indices = @transform_1, window_bounds = array<i64: 128, 128>}, {transform_indices = @transform_2, window_bounds = array<i64: 128, 128>}]} {
    %c0 = arith.constant 0 : index
    %c0_0 = arith.constant 0 : index
    %0 = vector.load %arg2[%c0, %c0_0] : memref<128x128xf32, #tpu.memory_space<vmem>>, vector<128x128xf32>
    %c0_1 = arith.constant 0 : index
    %c0_2 = arith.constant 0 : index
    %1 = vector.load %arg3[%c0_1, %c0_2] : memref<128x128xf32, #tpu.memory_space<vmem>>, vector<128x128xf32>
    %cst = arith.constant dense<0.000000e+00> : vector<128x128xf32>
    %2 = tpu.matmul %0, %1, %cst {dimension_numbers = #tpu.dot_dimension_numbers<[1], [0], [0], [1], [0, 0, 1, 1], [], []>} : vector<128x128xf32>, vector<128x128xf32>, vector<128x128xf32> -> vector<128x128xf32>
    %c0_3 = arith.constant 0 : index
    %c0_4 = arith.constant 0 : index
    %3 = vector.load %arg4[%c0_3, %c0_4] : memref<128x128xf32, #tpu.memory_space<vmem>>, vector<128x128xf32>
    tpu.vector_store %arg4[%c0_3, %c0_4], %2 {strides = array<i32>} : memref<128x128xf32, #tpu.memory_space<vmem>>, vector<128x128xf32>,
    return
  }
  func.func @transform_0(%arg0: i32, %arg1: i32) -> (i32, i32) {
    %c0_i32 = arith.constant 0 : i32
    %c0_i32_0 = arith.constant 0 : i32
    return %arg0, %c0_i32 : i32, i32
  }
  func.func @transform_1(%arg0: i32, %arg1: i32) -> (i32, i32) {
    %c0_i32 = arith.constant 0 : i32
    %c0_i32_0 = arith.constant 0 : i32
    return %c0_i32, %arg1 : i32, i32
  }
  func.func @transform_2(%arg0: i32, %arg1: i32) -> (i32, i32) {
    %c0_i32 = arith.constant 0 : i32
    return %arg0, %arg1 : i32, i32
  }
}

</mosaic_0001>

<bundles_post_ra>
// kernel: tpu_custom_call.1
= control target key start
LH: loop header
LB: loop body
LE: loop exit
PB: predicated region body
PF: predicated region fallthrough
CT: control target
= control target key end

     0   :  { %7 = vsyncpa [#allocation3], 0  ;;  %s1163_s0 = inlined_call_operand.hbm [shape: f32[128,128], index: 0, kind: input, shape index: {}]   ;;  %s1164_s1 = inlined_call_operand.hbm [shape: f32[128,640], index: 1, kind: input, shape index: {}]   ;;  %s1165_s2 = inlined_call_operand.hbm [shape: f32[128,640], index: 2, kind: output, shape index: {}]  }
   0x1   :  { %8 = vsyncpa [#allocation6], 0 }
   0x2   :  { %10 = vsyncpa [#allocation6 + $0x1], 0 }
   0x3   :  { %11 = vsyncpa [#allocation4], 0 }
   0x4   :  { %13 = vsyncpa [#allocation4 + $0x1], 0  ;;  %s906_s9 = smov 0   ;;  %s908_s10 = smov 0  }
   0x5   :  { %s910_s11 = smov 0   ;;  %s912_s12 = smov 0  }
   0x6   :  { %s914_s13 = smov 0   ;;  %s916_s14 = smov 0  }
   0x7 LB: > { %s506_s15 = sadd.s32 4294967295, %s880_s14   ;;  %s507_s16 = sadd.s32 4294967294, %s880_s14   ;;  %s880_s14 = sphi %s916_s14, %s19_s14   ;;  %s876_s13 = sphi %s914_s13, %s1190_s13   ;;  %s872_s12 = sphi %s912_s12, %s1189_s12   ;;  %s868_s11 = sphi %s910_s11, %s1188_s11   ;;  %s864_s10 = sphi %s908_s10, %s1187_s10   ;;  %s860_s9 = sphi %s906_s9, %s1186_s9  }
   0x8   : > { %p71_p0 = scmp.ne.s32.totalorder %s868_s11, %s864_s10  ;;  %p72_p1 = scmp.eq.s32.totalorder %s880_s14, 0 }
   0x9   : > { %p77_p2 = scmp.ne.s32.totalorder %s864_s10, %s860_s9  ;;  %p943_p3 = scmp.eq.s32.totalorder %s506_s15, 0 }
   0xa   : > { %p947_p4 = por %p72_p1, %p71_p0  ;;  %p103_p5 = scmp.eq.s32.totalorder %s506_s15, 4 }
   0xb   : > { %s1172_s17 = scalar_select %p943_p3, 1, 0 }
   0xc   : > { %p953_p6 = por %p943_p3, %p77_p2  ;;  %p109_p7 = scmp.eq.s32.totalorder %s507_s16, 4 }
   0xd   : > { %p957_p8 = por %p103_p5, %p71_p0  ;;  %p508_p9 = scmp.ge.s32.totalorder %s880_s14, 1 }
   0xe   : > { %s1174_s19 = scalar_select %p953_p6, 1, 0 }
   0xf   : > { %s1175_s20 = scalar_select %p957_p8, 1, 0 }
  0x10   : > { %p962_p10 = por %p109_p7, %p77_p2  ;;  %p116_p11 = scmp.lt.s32.totalorder %s880_s14, 6 }
  0x11   : > { %s882_s23 = smov [#allocation2]   ;;  %p678_p0 = scmp.lt.s32.totalorder %s880_s14, 5 }
  0x12   : > { %s1176_s21 = scalar_select %p962_p10, 1, 0 }
  0x13   : > { %p967_p12 = pnand %p508_p9, %p116_p11  ;;  %s131_s24 = sshll.u32 %s882_s23, 4  ;;  %s132_s24 = int_to_ptr.vmem [resolvable:$true] %s131_s24 }
  0x14   : > { %p982_p2 = pnand %p678_p0, %p947_p4  ;;  %s28_s27 = sadd.s32 1, %s876_s13 }
  0x15   : > { %s1177_s22 = scalar_select %p967_p12, 1, 0 }
  0x16   : > { %p665_p13 = pneg %p967_p12  ;;  %s736_s30 = scalar_lea.hbm %s1163_s0, 2048 }
  0x17   : > { %s1179_s26 = scalar_select %p982_p2, 1, 0 }
  0x18   : > { %p976_p1 = pnand %p665_p13, %p943_p3  ;;  %p737_p5 = scmp.ne.s32.totalorder %s1163_s0, %s736_s30 }
  0x19   : > { %p743_p4 = scmp.lt.u32.totalorder %s736_s30, %s1163_s0 }
  0x1a   : > { %p738_p7 = pneg %p976_p1 }
  0x1c   : > { %p739_p9 = pnand %p738_p7, %p737_p5 }
  0x1e   : > { %p740_p11 = pneg %p739_p9 }
  0x20   : > { %p745_p13 = pnand %p743_p4, %p740_p11 }
  0x22   : > { %748 = shalt.err (!%p745_p13)
}
  0x23   : > { %s749_s7 = scalar_lea.vmem %s132_s24, 2048  ;;  %p757_p6 = scmp.lt.s32.totalorder %s132_s24, %s132_s24 }
  0x24   : > { %p750_p0 = scmp.ne.s32.totalorder %s132_s24, %s749_s7  ;;  %p758_p3 = scmp.lt.s32.totalorder %s749_s7, %s749_s7 }
  0x26   : > { %p752_p10 = pnand %p750_p0, %p738_p7  ;;  %p759_p12 = por %p758_p3, %p757_p6 }
  0x28   : > { %p753_p8 = pneg %p752_p10 }
  0x2a   : > { %p760_p2 = pnand %p759_p12, %p753_p8 }
  0x2c   : > { %763 = shalt.err (!%p760_p2)
}
  0x2d   : > { %s883_s8 = smov 128   ;;  %s884_s15 = smov 8  }
  0x2e   : > { %668 = dma.hbm_to_vmem [thread:$0]  (!%p976_p1), %s1163_s0, 2048, %s132_s24, [#allocation3], %s883_s8, %s883_s8, %s884_s15  }
  0x2f   : > { %p29_p10 = scmp.ge.s32.totalorder %s28_s27, 5  ;;  %s64_s23 = sadd.s32 1, %s868_s11 }
  0x30   : > { %s145_s28 = sand.u32 1, %s868_s11   ;;  %s512_s3 = sshll.u32 %s876_s13, 7 }
  0x31   : > { %s1192_s27 = smov (%p29_p10, %s28_s27), 0  ;;  %s511_s29 = sshll.u32 %s145_s28, 7 }
  0x32   : > { %s61_s30 = ssub.s32 %s876_s13, %s1192_s27  ;;  %s1016_s5 = scalar_lea.hbm %s1164_s1, %s512_s3 }
  0x33   : > { %p62_p3 = scmp.eq.s32.totalorder %s61_s30, 0  ;;  %s149_s24 = scalar_lea.vmem [#allocation5], %s511_s29 }
  0x34   : > { %s155_s6 = sshll.u32 %s149_s24, 4  ;;  %s1023_s16 = scalar_lea.sflag [#allocation6], %s145_s28  ;;  %s1021_s6 = int_to_ptr.vmem [resolvable:$true] %s155_s6 }
  0x35   : > { %s1019_s7 = scalar_select %p62_p3, %s868_s11, %s64_s23  }
  0x36   : > { %s764_s18 = scalar_lea.hbm %s1016_s5, 2048  ;;  %p1180_p8 = scmp.ne.s32.totalorder %s1179_s26, 0 }
  0x37   : > { %p765_p6 = scmp.ne.s32.totalorder %s1016_s5, %s764_s18  ;;  %s769_s25 = scalar_lea.hbm %s1164_s1, 10240 }
  0x38   : > { %p766_p12 = pneg %p1180_p8  ;;  %p770_p5 = scmp.lt.u32.totalorder %s1016_s5, %s1164_s1 }
  0x39   : > { %p771_p7 = scmp.lt.u32.totalorder %s769_s25, %s764_s18  ;;  %p773_p11 = scmp.lt.u32.totalorder %s764_s18, %s1016_s5 }
  0x3a   : > { %p767_p1 = pnand %p766_p12, %p765_p6 }
  0x3b   : > { %p772_p9 = por %p771_p7, %p770_p5 }
  0x3c   : > { %p768_p2 = pneg %p767_p1 }
  0x3d   : > { %p774_p4 = por %p773_p11, %p772_p9 }
  0x3f   : > { %p775_p13 = pnand %p774_p4, %p768_p2 }
  0x41   : > { %778 = shalt.err (!%p775_p13)
}
  0x42   : > { %s779_s23 = scalar_lea.vmem %s1021_s6, 2048  ;;  %s885_s28 = smov [#allocation5]  }
  0x43   : > { %p780_p0 = scmp.ne.s32.totalorder %s1021_s6, %s779_s23  ;;  %s784_s24 = sshll.u32 %s885_s28, 4  ;;  %s785_s24 = int_to_ptr.vmem [resolvable:$false] %s784_s24 }
  0x44   : > { %s786_s30 = scalar_lea.vmem %s785_s24, 4096  ;;  %p787_p6 = scmp.lt.s32.totalorder %s1021_s6, %s785_s24 }
  0x45   : > { %p782_p10 = pnand %p780_p0, %p766_p12  ;;  %p788_p1 = scmp.lt.s32.totalorder %s786_s30, %s779_s23 }
  0x47   : > { %p783_p3 = pneg %p782_p10  ;;  %p789_p5 = por %p788_p1, %p787_p6 }
  0x49   : > { %p790_p7 = pnand %p789_p5, %p783_p3 }
  0x4b   : > { %793 = shalt.err (!%p790_p7)
}
  0x4c   : > { %s886_s18 = smov 640   ;;  %p1181_p12 = scmp.ne.s32.totalorder %s1177_s22, 0 }
  0x4d   : > { %672 = dma.hbm_to_vmem [thread:$0]  (!%p1180_p8), %s1016_s5, 2048, %s1021_s6, %s1023_s16, %s886_s18, %s883_s8, %s884_s15  }
  0x4e   : > { %167 = sbr.rel (%p1181_p12) target bundleno = 366 (0x16e), region = 28  ;;  %p1182_p2 = scmp.ne.s32.totalorder (!%p1181_p12), %s1172_s17, 0 }
  0x55   : > { %847 = dma.done.wait (%p1182_p2), [#allocation3], 2048  }
  0x56   : > { %849 = vsyncadd (%p1182_p2), [#allocation3], 4294965248  ;;  %s1060_s3 = sand.u32 1, %s864_s10   ;;  %p1183_p8 = scmp.ne.s32.totalorder %s1174_s19, 0 }
  0x57   : > { %s515_s26 = sshll.u32 %s1060_s3, 7  ;;  %s174_s25 = scalar_lea.sflag [#allocation6], %s1060_s3 }
  0x58   : > { %s1066_s8 = scalar_lea.vmem [#allocation5], %s515_s26 }
  0x59   : > { %851 = dma.done.wait (%p1183_p8), %s174_s25, 2048  }
  0x5a   : > { %853 = vsyncadd (%p1183_p8), %s174_s25, 4294965248  ;;  %v216_v0 = vld [vmem:[%s1066_s8] sm:$0xff]  ;;  %v217_v1 = vld [vmem:[%s1066_s8 + $0x8] sm:$0xff]  ;;  %s1090_s17 = scalar_lea.vmem [#allocation7], %s515_s26  ;;  %s518_s19 = sshll.u32 %s872_s12, 7 }
  0x5b   : > { %v218_v2 = vld [vmem:[%s1066_s8 + $0x10] sm:$0xff]  ;;  %v609_v3 = vpack.c.bf16 %v217_v1, %v216_v0  ;;  %v219_v4 = vld [vmem:[%s1066_s8 + $0x18] sm:$0xff]  ;;  %v220_v6 = vld [vmem:[%s1066_s8 + $0x20] sm:$0xff]  ;;  %s409_s22 = sshll.u32 %s1090_s17, 4  ;;  %s1109_s6 = scalar_lea.hbm %s1165_s2, %s518_s19  ;;  %s1111_s22 = int_to_ptr.vmem [resolvable:$true] %s409_s22 }
  0x5c   : > { %v613_v5 = vpack.c.bf16 %v219_v4, %v218_v2  ;;  %v221_v7 = vld [vmem:[%s1066_s8 + $0x28] sm:$0xff]  ;;  %v200_v9 = vld [vmem:[#allocation2] sm:$0xff]  ;;  %v222_v11 = vld [vmem:[%s1066_s8 + $0x30] sm:$0xff]  ;;  %s394_s12 = scalar_lea.sflag [#allocation4], %s1060_s3  ;;  %s794_s16 = scalar_lea.vmem %s1111_s22, 2048 }
  0x5d   : > { %610 = vmatprep.subr.bf16.mxu0 %v609_v3  ;;  %641 = vmatprep.subr.bf16.mxu1 %v609_v3  ;;  %v617_v8 = vpack.c.bf16 %v221_v7, %v220_v6  ;;  %v208_v10 = vld [vmem:[#allocation2 + $0x40] sm:$0xff]  ;;  %v223_v12 = vld [vmem:[%s1066_s8 + $0x38] sm:$0xff]  ;;  %v225_v15 = vld [vmem:[%s1066_s8 + $0x48] sm:$0xff]  ;;  %p795_p9 = scmp.ne.s32.totalorder %s1111_s22, %s794_s16  ;;  %p1184_p11 = scmp.ne.s32.totalorder %s1175_s20, 0 }
  0x5e   : > { %612 = vmatpush3.bf16.msra.mxu0 %v609_v3  ;;  %649 = vmatpush3.bf16.msra.mxu1 %v609_v3  ;;  %v621_v13 = vpack.c.bf16 %v223_v12, %v222_v11  ;;  %v224_v14 = vld [vmem:[%s1066_s8 + $0x40] sm:$0xff]  ;;  %v226_v17 = vld [vmem:[%s1066_s8 + $0x50] sm:$0xff]  ;;  %v227_v18 = vld [vmem:[%s1066_s8 + $0x58] sm:$0xff]  ;;  %s887_s29 = smov [#allocation7]  }
  0x5f   : > { %614 = vmatprep.subr.bf16.mxu0 %v613_v5  ;;  %642 = vmatprep.subr.bf16.mxu1 %v613_v5  ;;  %v625_v16 = vpack.c.bf16 %v225_v15, %v224_v14  ;;  %v629_v19 = vpack.c.bf16 %v227_v18, %v226_v17  ;;  %v228_v20 = vld [vmem:[%s1066_s8 + $0x60] sm:$0xff]  ;;  %v229_v21 = vld [vmem:[%s1066_s8 + $0x68] sm:$0xff]  ;;  %v230_v23 = vld [vmem:[%s1066_s8 + $0x70] sm:$0xff]  ;;  %p796_p4 = pnand %p795_p9, %p1184_p11  ;;  %s798_s4 = sshll.u32 %s887_s29, 4  ;;  %s799_s4 = int_to_ptr.vmem [resolvable:$false] %s798_s4 }
  0x60   : > { %585 = vmatprep.mubr.f32.mxu0 %v200_v9  ;;  %597 = vmatprep.mubr.f32.mxu1 %v208_v10  ;;  %v633_v22 = vpack.c.bf16 %v229_v21, %v228_v20  ;;  %v231_v24 = vld [vmem:[%s1066_s8 + $0x78] sm:$0xff]  ;;  %v201_v26 = vld [vmem:[#allocation2 + $0x8] sm:$0xff]  ;;  %v202_v28 = vld [vmem:[#allocation2 + $0x10] sm:$0xff]  ;;  %s800_s23 = scalar_lea.vmem %s799_s4, 4096  ;;  %p801_p0 = scmp.lt.s32.totalorder %s1111_s22, %s799_s4 }
  0x61   : > { %v637_v25 = vpack.c.bf16 %v231_v24, %v230_v23  ;;  %v209_v27 = vld [vmem:[#allocation2 + $0x48] sm:$0xff]  ;;  %v210_v29 = vld [vmem:[#allocation2 + $0x50] sm:$0xff]  ;;  %v203_v30 = vld [vmem:[#allocation2 + $0x18] sm:$0xff]  ;;  %p797_p13 = pneg %p796_p4  ;;  %p802_p10 = scmp.lt.s32.totalorder %s800_s23, %s794_s16 }
  0x62   : > { %616 = vmatpush3.bf16.msra.mxu0 %v613_v5  ;;  %650 = vmatpush3.bf16.msra.mxu1 %v613_v5  ;;  %v211_v31 = vld [vmem:[#allocation2 + $0x58] sm:$0xff]  ;;  %v204_v32 = vld [vmem:[#allocation2 + $0x20] sm:$0xff]  ;;  %v205_v34 = vld [vmem:[#allocation2 + $0x28] sm:$0xff] }
  0x63   : > { %618 = vmatprep.subr.bf16.mxu0 %v617_v8  ;;  %643 = vmatprep.subr.bf16.mxu1 %v617_v8  ;;  %v212_v33 = vld [vmem:[#allocation2 + $0x60] sm:$0xff]  ;;  %v213_v35 = vld [vmem:[#allocation2 + $0x68] sm:$0xff]  ;;  %v206_v36 = vld [vmem:[#allocation2 + $0x30] sm:$0xff]  ;;  %p803_p3 = por %p802_p10, %p801_p0 }
  0x64   : > { %v214_v37 = vld [vmem:[#allocation2 + $0x70] sm:$0xff]  ;;  %v207_v38 = vld [vmem:[#allocation2 + $0x38] sm:$0xff] }
  0x65   : > { %v215_v39 = vld [vmem:[#allocation2 + $0x78] sm:$0xff]  ;;  %p804_p6 = pnand %p803_p3, %p797_p13 }
  0x66   : > { %620 = vmatpush3.bf16.msra.mxu0 %v617_v8  ;;  %651 = vmatpush3.bf16.msra.mxu1 %v617_v8 }
  0x67   : > { %622 = vmatprep.subr.bf16.mxu0 %v621_v13  ;;  %644 = vmatprep.subr.bf16.mxu1 %v621_v13 }
  0x6a   : > { %624 = vmatpush3.bf16.msra.mxu0 %v621_v13  ;;  %652 = vmatpush3.bf16.msra.mxu1 %v621_v13 }
  0x6b   : > { %626 = vmatprep.subr.bf16.mxu0 %v625_v16  ;;  %645 = vmatprep.subr.bf16.mxu1 %v625_v16 }
  0x6e   : > { %628 = vmatpush3.bf16.msra.mxu0 %v625_v16  ;;  %653 = vmatpush3.bf16.msra.mxu1 %v625_v16 }
  0x6f   : > { %630 = vmatprep.subr.bf16.mxu0 %v629_v19  ;;  %646 = vmatprep.subr.bf16.mxu1 %v629_v19 }
  0x72   : > { %632 = vmatpush3.bf16.msra.mxu0 %v629_v19  ;;  %654 = vmatpush3.bf16.msra.mxu1 %v629_v19 }
  0x73   : > { %634 = vmatprep.subr.bf16.mxu0 %v633_v22  ;;  %647 = vmatprep.subr.bf16.mxu1 %v633_v22 }
  0x76   : > { %636 = vmatpush3.bf16.msra.mxu0 %v633_v22  ;;  %655 = vmatpush3.bf16.msra.mxu1 %v633_v22 }
  0x77   : > { %638 = vmatprep.subr.bf16.mxu0 %v637_v25  ;;  %648 = vmatprep.subr.bf16.mxu1 %v637_v25 }
  0x7a   : > { %640 = vmatpush3.bf16.msra.mxu0 %v637_v25  ;;  %656 = vmatpush3.bf16.msra.mxu1 %v637_v25 }
  0x7d   : > { %586 = vmatmul.mubr.f32.vlgmr.msra.gmra.mrb[0].mxu0 %v201_v26  ;;  %598 = vmatmul.mubr.f32.vlgmr.msra.gmra.mrb[0].mxu1 %v209_v27 }
  0x7e   : > { %588 = vmatprep.mubr.f32.mxu0 %v202_v28  ;;  %600 = vmatprep.mubr.f32.mxu1 %v210_v29 }
  0x81   : > { %589 = vmatmul.mubr.f32.gmra.mrb[2].mxu0 %v203_v30  ;;  %601 = vmatmul.mubr.f32.gmra.mrb[2].mxu1 %v211_v31 }
  0x82   : > { %591 = vmatprep.mubr.f32.mxu0 %v204_v32  ;;  %603 = vmatprep.mubr.f32.mxu1 %v212_v33 }
  0x85   : > { %592 = vmatmul.mubr.f32.gmra.mrb[4].mxu0 %v205_v34  ;;  %604 = vmatmul.mubr.f32.gmra.mrb[4].mxu1 %v213_v35 }
  0x86   : > { %594 = vmatprep.mubr.f32.mxu0 %v206_v36  ;;  %606 = vmatprep.mubr.f32.mxu1 %v214_v37 }
  0x89   : > { %595 = vmatmul.mubr.f32.gmra.mrb[6].mxu0 %v207_v38  ;;  %607 = vmatmul.mubr.f32.gmra.mrb[6].mxu1 %v215_v39 }
 0x150   : > { %v587_v40 = vpop.f32.mrb[0].mxu0  ;;  %v599_v41 = vpop.f32.mrb[0].mxu1 }
 0x151   : > { %378 = vst [vmem:[%s1090_s17 + $0x8] sm:$0xff] %v587_v40  ;;  %386 = vst [vmem:[%s1090_s17 + $0x48] sm:$0xff] %v599_v41  ;;  %v298_v42 = vpop.f32.mrb[1].mxu0  ;;  %v338_v43 = vpop.f32.mrb[1].mxu1 }
 0x152   : > { %377 = vst [vmem:[%s1090_s17] sm:$0xff] %v298_v42  ;;  %385 = vst [vmem:[%s1090_s17 + $0x40] sm:$0xff] %v338_v43 }
 0x154   : > { %v590_v44 = vpop.f32.mrb[2].mxu0  ;;  %v602_v45 = vpop.f32.mrb[2].mxu1 }
 0x155   : > { %380 = vst [vmem:[%s1090_s17 + $0x18] sm:$0xff] %v590_v44  ;;  %388 = vst [vmem:[%s1090_s17 + $0x58] sm:$0xff] %v602_v45  ;;  %v308_v46 = vpop.f32.mrb[3].mxu0  ;;  %v348_v47 = vpop.f32.mrb[3].mxu1 }
 0x156   : > { %379 = vst [vmem:[%s1090_s17 + $0x10] sm:$0xff] %v308_v46  ;;  %387 = vst [vmem:[%s1090_s17 + $0x50] sm:$0xff] %v348_v47 }
 0x158   : > { %v593_v48 = vpop.f32.mrb[4].mxu0  ;;  %v605_v49 = vpop.f32.mrb[4].mxu1 }
 0x159   : > { %382 = vst [vmem:[%s1090_s17 + $0x28] sm:$0xff] %v593_v48  ;;  %390 = vst [vmem:[%s1090_s17 + $0x68] sm:$0xff] %v605_v49  ;;  %v318_v50 = vpop.f32.mrb[5].mxu0  ;;  %v358_v51 = vpop.f32.mrb[5].mxu1 }
 0x15a   : > { %381 = vst [vmem:[%s1090_s17 + $0x20] sm:$0xff] %v318_v50  ;;  %389 = vst [vmem:[%s1090_s17 + $0x60] sm:$0xff] %v358_v51 }
 0x15c   : > { %v596_v52 = vpop.f32.mrb[6].mxu0  ;;  %v608_v53 = vpop.f32.mrb[6].mxu1 }
 0x15d   : > { %384 = vst [vmem:[%s1090_s17 + $0x38] sm:$0xff] %v596_v52  ;;  %392 = vst [vmem:[%s1090_s17 + $0x78] sm:$0xff] %v608_v53  ;;  %v328_v54 = vpop.f32.mrb[7].mxu0  ;;  %v368_v55 = vpop.f32.mrb[7].mxu1 }
 0x15e   : > { %383 = vst [vmem:[%s1090_s17 + $0x30] sm:$0xff] %v328_v54  ;;  %391 = vst [vmem:[%s1090_s17 + $0x70] sm:$0xff] %v368_v55 }
 0x15f   : > { %807 = shalt.err (!%p804_p6)
}
 0x160   : > { %s808_s28 = scalar_lea.hbm %s1109_s6, 2048  ;;  %s812_s18 = scalar_lea.hbm %s1165_s2, 10240 }
 0x161   : > { %p809_p1 = scmp.ne.s32.totalorder %s1109_s6, %s808_s28  ;;  %p813_p12 = scmp.lt.u32.totalorder %s1109_s6, %s1165_s2 }
 0x162   : > { %p814_p2 = scmp.lt.u32.totalorder %s812_s18, %s808_s28  ;;  %p816_p9 = scmp.lt.u32.totalorder %s808_s28, %s1109_s6 }
 0x163   : > { %p810_p5 = pnand %p809_p1, %p1184_p11 }
 0x164   : > { %p815_p8 = por %p814_p2, %p813_p12 }
 0x165   : > { %p811_p7 = pneg %p810_p5 }
 0x166   : > { %p817_p4 = por %p816_p9, %p815_p8 }
 0x168   : > { %p818_p13 = pnand %p817_p4, %p811_p7 }
 0x16a   : > { %821 = shalt.err (!%p818_p13)
}
 0x16b   : > { %s888_s8 = smov 128   ;;  %s889_s17 = smov 640  }
 0x16c   : > { %s890_s19 = smov 8  }
 0x16d   : > { %663 = dma.vmem_to_hbm [thread:$0]  (%p1184_p11), %s1111_s22, 2048, %s1109_s6, %s394_s12, %s888_s8, %s889_s17, %s890_s19  }
 0x16e PF: > { %p680_p0 = scmp.ge.s32.totalorder %s880_s14, 2  ;;  %s424_s15 = sand.u32 1, %s860_s9  }
 0x16f   : > { %p1185_p10 = scmp.ne.s32.totalorder %s1176_s21, 0  ;;  %s425_s5 = scalar_lea.sflag [#allocation4], %s424_s15 }
 0x171   : > { %p674_p3 = pnand %p680_p0, %p1185_p10 }
 0x173   : > { %855 = dma.done.wait (!%p674_p3), %s425_s5, 2048  }
 0x174   : > { %857 = vsyncadd (!%p674_p3), %s425_s5, 4294965248  ;;  %s19_s14 = sadd.s32 1, %s880_s14   ;;  %s1186_s9 = smov %s864_s10 }
 0x175   : > { %p16_p6 = scmp.ge.s32.totalorder %s19_s14, 7   ;;  %s1187_s10 = smov %s868_s11 }
 0x176   : > { %s1188_s11 = smov %s1019_s7  ;;  %s1189_s12 = smov %s876_s13 }
 0x177   : > { %s1190_s13 = smov %s1192_s27  ;;  %18 = sbr.rel (!%p16_p6) target bundleno = 7 (0x7), region = 79 }
 0x17e   :  { %430 = vsyncpa [#allocation3], 1 }
 0x17f   :  { %432 = vsyncpa [#allocation3 + $0x1], 1 }
 0x180   :  { %433 = vsyncpa [#allocation6], 1 }
 0x181   :  { %435 = vsyncpa [#allocation6 + $0x1], 1 }
 0x182   :  { %436 = vsyncpa [#allocation4], 1 }
 0x183   :  { %438 = vsyncpa [#allocation4 + $0x1], 1 }

</bundles_post_ra>
